<compile_context>
chip_gen: v7x
topology: tpu7x:2x2x1
jax: 0.10.0
libtpu: 0.0.40
codegen_flags: <defaults>
</compile_context>

<pallas_src>
import jax
import jax.numpy as jnp
from jax.experimental import pallas as pl
from jax.experimental.pallas import tpu as pltpu


# --------------------------------------------------------------------------- #
# Kernels
# --------------------------------------------------------------------------- #
def bn_stats_kernel(x_ref, acc_ref):
    """Per-channel sum / sum-of-squares partials for one (n, h-block).

    x_ref:   (1, C, tH, W) input block (native dtype)
    acc_ref: (1, 2, C, W)  f32 accumulator, resident across the h axis:
             acc[0, 0] += row-sums, acc[0, 1] += row-sums of squares.
    """
    @pl.when(pl.program_id(1) == 0)
    def _():
        acc_ref[...] = jnp.zeros_like(acc_ref)

    x3 = x_ref[0].astype(jnp.float32)              # (C, tH, W), cast fused here
    acc_ref[0, 0] += jnp.sum(x3, axis=1)           # (C, W)
    acc_ref[0, 1] += jnp.sum(x3 * x3, axis=1)      # (C, W)


def transition_kernel(scale_ref, bias_ref, w_ref, p_ref, x_ref, o_ref,
                      pooled_ref, slab_ref):
    """Fused BN -> ReLU -> 2x2 avg-pool -> 1x1 conv on one (n, h-block).

    scale_ref, bias_ref: (C, 1) f32 folded BN affine (per channel)
    w_ref:               (Cout, C) 1x1 conv weight, 1/4 pool factor folded in
    p_ref:               (W, W//2) 0/1 column-pair-sum selector
    x_ref:               (1, C, tH, W) input block (NCHW, native dtype)
    o_ref:               (1, Cout, (tH//2)*(W//2)) lane-dense output slab
    pooled_ref:          (C, tH//2, W//2) f32 VMEM scratch
    slab_ref:            (C, (tH//2)*(W//2)) f32 VMEM scratch
    """
    _, C, tH, W = x_ref.shape
    Hh, Wh = tH // 2, W // 2

    # BatchNorm (per-channel scale/bias broadcast over each channel's (tH, W)
    # tile) + ReLU, all in f32.  scale/bias are (C, 1): no repeated copies.
    x3 = x_ref[0].astype(jnp.float32)                          # (C, tH, W)
    s = scale_ref[...].reshape(C, 1, 1)
    b = bias_ref[...].reshape(C, 1, 1)
    y = jnp.maximum(x3 * s + b, 0.0)                           # (C, tH, W)

    # 2x2/stride-2 average pool (the 1/4 is folded into w_ref):
    #   rows: sublane-strided sum of adjacent row pairs on the (C*tH, W) view
    #         (pairs never straddle a channel boundary: tH is even),
    #   cols: one MXU matmul against the 0/1 pair-sum selector P.
    y2 = y.reshape(C * tH, W)                                  # leading collapse
    a = y2[0::2, :] + y2[1::2, :]                              # (C*Hh, W)
    pooled_ref[...] = jnp.dot(
        a.astype(p_ref.dtype), p_ref[...],
        preferred_element_type=jnp.float32).reshape(C, Hh, Wh)

    # Re-pack the pooled block as a lane-dense (C, Hh*Wh) slab with cheap
    # static VMEM-only copies (only pooled data, 1/16 of the block, moves), so
    # the 1x1 conv below is ONE MXU matmul with N = Hh*Wh lanes and the HBM
    # store is a single full-width store (no masked per-row vst).
    for h in range(Hh):                                        # static, tiny copies
        slab_ref[:, h * Wh:(h + 1) * Wh] = pooled_ref[:, h, :]

    z = jnp.dot(w_ref[...], slab_ref[...].astype(w_ref.dtype),
                preferred_element_type=jnp.float32)            # (Cout, Hh*Wh)
    o_ref[0] = z.astype(o_ref.dtype)


# --------------------------------------------------------------------------- #
# Tiling / VMEM helpers
# --------------------------------------------------------------------------- #
def _vmem_capacity_bytes():
    try:
        return int(pltpu.get_tpu_info().vmem_capacity_bytes)
    except Exception:
        return 64 << 20     # conservative default (v7x per-core VMEM)


def _working_set_bytes(C, tH, W, Cout, in_itemsize, mm_itemsize):
    """Approximate per-grid-step VMEM footprint of transition_kernel."""
    Hh, Wh = tH // 2, W // 2
    blk_in = C * tH * W * in_itemsize              # one input block
    f32_temps = 3 * C * tH * W * 4                 # x3 / y / row-pool temporaries
    pooled = C * Hh * Wh * 4
    slab = C * Hh * Wh * 4
    out_blk = Cout * Hh * Wh * 4
    consts = 2 * C * 128 * 4 + Cout * C * mm_itemsize + W * Wh * mm_itemsize
    return 2 * blk_in + f32_temps + pooled + slab + 2 * out_blk + consts + (1 << 20)


def _pick_block_h(N, C, H, W, Cout, in_itemsize, mm_itemsize, budget_bytes):
    """Largest legal H-tile whose per-step working set fits budget_bytes.

    Legality: tH == H, or (tH % 16 == 0, H % tH == 0 and
    ((tH//2)*(W//2)) % 128 == 0) so input and flattened-output blocks obey the
    (8/16, 128) tiling rules.  If N == 1, prefer >= 2 H-blocks so both v7x
    TensorCores get parallel work.  If nothing fits, the smallest legal tile is
    returned (may exceed the budget; the explicit vmem_limit_bytes still leaves
    large headroom over the budget).
    """
    cands = [H] + [t for t in range(16, H, 16)
                   if H % t == 0 and ((t // 2) * (W // 2)) % 128 == 0]

    def fits(t):
        return _working_set_bytes(C, t, W, Cout, in_itemsize,
                                  mm_itemsize) <= budget_bytes

    fitting = [t for t in cands if fits(t)]
    if N < 2:
        multi = [t for t in fitting if H // t >= 2]
        if multi:
            return max(multi)
    if fitting:
        return max(fitting)
    smaller = [t for t in cands if t != H]
    return min(smaller) if smaller else H


# --------------------------------------------------------------------------- #
# BN batch statistics (training-mode), single native-dtype pass over x
# --------------------------------------------------------------------------- #
def _bn_batch_affine(x_nchw, gamma, beta, eps, tH, vmem_limit):
    N, C, H, W = x_nchw.shape
    n_hblk = H // tH
    stats_bytes = x_nchw.size * x_nchw.dtype.itemsize + N * 2 * C * W * 4
    partials = pl.pallas_call(
        bn_stats_kernel,
        out_shape=jax.ShapeDtypeStruct((N, 2, C, W), jnp.float32),
        grid_spec=pltpu.PrefetchScalarGridSpec(
            num_scalar_prefetch=0,
            grid=(N, n_hblk),
            in_specs=[pl.BlockSpec((1, C, tH, W), lambda n, hb: (n, 0, hb, 0))],
            out_specs=pl.BlockSpec((1, 2, C, W), lambda n, hb: (n, 0, 0, 0)),
        ),
        compiler_params=pltpu.CompilerParams(
            dimension_semantics=("parallel", "arbitrary"),
            vmem_limit_bytes=vmem_limit),
        cost_estimate=pl.CostEstimate(flops=3 * x_nchw.size, transcendentals=0,
                                      bytes_accessed=stats_bytes),
    )(x_nchw)

    inv_cnt = 1.0 / float(N * H * W)
    m1 = jnp.sum(partials[:, 0], axis=(0, 2)) * inv_cnt           # mean
    m2 = jnp.sum(partials[:, 1], axis=(0, 2)) * inv_cnt           # mean of squares
    var = jnp.maximum(m2 - m1 * m1, 0.0)                          # biased variance
    scale = gamma.astype(jnp.float32) * jax.lax.rsqrt(var + eps)
    bias = beta.astype(jnp.float32) - m1 * scale
    return scale, bias


# --------------------------------------------------------------------------- #
# Wrapper
# --------------------------------------------------------------------------- #
def transition_block(x_nchw, gamma, beta, conv_w, eps=1e-5,
                     bn_scale=None, bn_bias=None,
                     matmul_dtype=jnp.bfloat16,
                     block_h=None, vmem_budget_bytes=None):
    """DenseNet TransitionBlock forward (training-mode BN, droprate == 0).

    x_nchw: (N, C, H, W) float32 or bfloat16.  conv_w: (Cout, C, 1, 1).
    bn_scale/bn_bias: optional precomputed per-channel BN affine (inference
        path); omitted -> batch stats via a single-pass Pallas reduction.
    matmul_dtype: MXU operand dtype (bf16 default, f32 accumulation always).
    """
    N, C, H, W = x_nchw.shape
    Cout = conv_w.shape[0]
    assert H % 2 == 0 and W % 2 == 0

    cap = _vmem_capacity_bytes()
    budget = vmem_budget_bytes if vmem_budget_bytes is not None else (3 * cap) // 8
    mm_itemsize = jnp.dtype(matmul_dtype).itemsize
    tH = block_h if block_h is not None else _pick_block_h(
        N, C, H, W, Cout, x_nchw.dtype.itemsize, mm_itemsize, budget)
    assert H % tH == 0 and tH % 2 == 0
    Hh, Wh = tH // 2, W // 2
    n_hblk = H // tH
    vmem_limit = int(cap * 0.85)

    if bn_scale is None or bn_bias is None:
        scale, bias = _bn_batch_affine(x_nchw, gamma, beta, eps, tH, vmem_limit)
    else:
        scale = bn_scale.astype(jnp.float32)
        bias = bn_bias.astype(jnp.float32)
    scale = scale.reshape(C, 1)
    bias = bias.reshape(C, 1)

    # 1x1 conv weight with the 2x2-average 1/4 folded in (MXU operand dtype).
    w4 = (0.25 * conv_w.reshape(Cout, C).astype(jnp.float32)).astype(matmul_dtype)
    # Column-pair-sum selector: P[w, wo] = 1 iff w // 2 == wo (exact in bf16).
    p_sel = (jnp.arange(W)[:, None] // 2 == jnp.arange(Wh)[None, :]).astype(matmul_dtype)

    flops = N * (2 * C * (H // 2) * W * Wh          # column-pool matmul
                 + 2 * Cout * C * (H // 2) * Wh     # 1x1 conv matmul
                 + 4 * C * H * W)                   # BN / ReLU / row-pool VPU work
    bytes_accessed = (x_nchw.size * x_nchw.dtype.itemsize
                      + 8 * C + (w4.size + p_sel.size) * mm_itemsize
                      + 4 * N * Cout * (H // 2) * (W // 2))

    out_flat = pl.pallas_call(
        transition_kernel,
        out_shape=jax.ShapeDtypeStruct((N, Cout, (H // 2) * (W // 2)), jnp.float32),
        grid_spec=pltpu.PrefetchScalarGridSpec(
            num_scalar_prefetch=0,
            grid=(N, n_hblk),
            in_specs=[
                pl.BlockSpec((C, 1), lambda n, hb: (0, 0)),
                pl.BlockSpec((C, 1), lambda n, hb: (0, 0)),
                pl.BlockSpec((Cout, C), lambda n, hb: (0, 0)),
                pl.BlockSpec((W, Wh), lambda n, hb: (0, 0)),
                pl.BlockSpec((1, C, tH, W), lambda n, hb: (n, 0, hb, 0)),
            ],
            out_specs=pl.BlockSpec((1, Cout, Hh * Wh), lambda n, hb: (n, 0, hb)),
            scratch_shapes=[pltpu.VMEM((C, Hh, Wh), jnp.float32),
                            pltpu.VMEM((C, Hh * Wh), jnp.float32)],
        ),
        compiler_params=pltpu.CompilerParams(
            dimension_semantics=("parallel", "parallel"),
            vmem_limit_bytes=vmem_limit),
        cost_estimate=pl.CostEstimate(flops=flops, transcendentals=0,
                                      bytes_accessed=bytes_accessed),
    )(scale, bias, w4, p_sel, x_nchw)

    # Free metadata reshape (row-major contiguous), NOT a transpose.
    return out_flat.reshape(N, Cout, H // 2, W // 2)


# --------------------------------------------------------------------------- #
# Pure-JAX reference (PyTorch forward, training-mode BN)
# --------------------------------------------------------------------------- #
def reference_forward(x_nchw, gamma, beta, conv_w, eps=1e-5):
    x = x_nchw.astype(jnp.float32)
    mean = jnp.mean(x, axis=(0, 2, 3))
    var = jnp.var(x, axis=(0, 2, 3))
    xn = (x - mean[None, :, None, None]) / jnp.sqrt(var[None, :, None, None] + eps)
    y = jnp.maximum(gamma[None, :, None, None] * xn + beta[None, :, None, None], 0.0)
    Cout, C = conv_w.shape[0], conv_w.shape[1]
    z = jnp.einsum('nchw,oc->nohw', y, conv_w.reshape(Cout, C))
    N, _, H, W = z.shape
    return z.reshape(N, Cout, H // 2, 2, W // 2, 2).mean(axis=(3, 5))


if __name__ == "__main__":
    in_planes, out_planes = 8, 4
    N, H, W = 2, 16, 16

    key = jax.random.PRNGKey(0)
    kx, kw, kg, kb = jax.random.split(key, 4)

    x = jax.random.normal(kx, (N, in_planes, H, W), dtype=jnp.float32)
    fan_in = in_planes
    conv_w = jax.random.uniform(
        kw, (out_planes, in_planes, 1, 1), dtype=jnp.float32,
        minval=-1.0 / (fan_in ** 0.5), maxval=1.0 / (fan_in ** 0.5))
    gamma = 1.0 + 0.1 * jax.random.normal(kg, (in_planes,), dtype=jnp.float32)
    beta = 0.1 * jax.random.normal(kb, (in_planes,), dtype=jnp.float32)

    ref = reference_forward(x, gamma, beta, conv_w)

    # Exact-math path (f32 MXU operands): strict check against the reference.
    out_f32 = jax.block_until_ready(
        transition_block(x, gamma, beta, conv_w, matmul_dtype=jnp.float32))
    assert out_f32.shape == (N, out_planes, H // 2, W // 2), out_f32.shape
    assert jnp.allclose(out_f32, ref, atol=1e-4, rtol=1e-4), (
        float(jnp.max(jnp.abs(out_f32 - ref))))

    # Default path (bf16 MXU operands, f32 accumulation).
    out_bf = jax.block_until_ready(transition_block(x, gamma, beta, conv_w))
    assert jnp.allclose(out_bf, ref, atol=5e-2, rtol=5e-2), (
        float(jnp.max(jnp.abs(out_bf - ref))))

    # bf16 activations (halved HBM/DMA traffic; in-kernel math stays f32).
    x_bf16 = x.astype(jnp.bfloat16)
    ref16 = reference_forward(x_bf16.astype(jnp.float32), gamma, beta, conv_w)
    out16 = jax.block_until_ready(transition_block(x_bf16, gamma, beta, conv_w))
    assert jnp.allclose(out16, ref16, atol=5e-2, rtol=5e-2), (
        float(jnp.max(jnp.abs(out16 - ref16))))

    print("KERNEL_OK")
</pallas_src>

<mosaic_0001>
module attributes {stable_mosaic.version = 11 : i64} {
  func.func @bn_stats_kernel(%arg0: i32, %arg1: i32, %arg2: memref<1x8x16x16xf32, #tpu.memory_space<vmem>>, %arg3: memref<1x2x8x16xf32, #tpu.memory_space<vmem>>) attributes {dimension_semantics = [#tpu.dimension_semantics<parallel>, #tpu.dimension_semantics<arbitrary>], iteration_bounds = array<i64: 2, 1>, scalar_prefetch = 0 : i64, scratch_operands = 0 : i64, tpu.core_type = #tpu.core_type<tc>, window_params = [{transform_indices = @transform_0, window_bounds = array<i64: 1, 8, 16, 16>}, {transform_indices = @transform_1, window_bounds = array<i64: 1, 2, 8, 16>}]} {
    %c0_i32 = arith.constant 0 : i32
    %0 = arith.cmpi eq, %arg1, %c0_i32 : i32
    %1 = arith.extui %0 : i1 to i32
    %c0_i32_0 = arith.constant 0 : i32
    %2 = arith.cmpi ne, %1, %c0_i32_0 : i32
    scf.if %2 {
      %cst_20 = arith.constant 0.000000e+00 : f32
      %20 = vector.broadcast %cst_20 : f32 to vector<1x2x8x16xf32>
      %c0_21 = arith.constant 0 : index
      %c0_22 = arith.constant 0 : index
      %c0_23 = arith.constant 0 : index
      %c0_24 = arith.constant 0 : index
      %21 = vector.load %arg3[%c0_21, %c0_22, %c0_23, %c0_24] : memref<1x2x8x16xf32, #tpu.memory_space<vmem>>, vector<1x2x8x16xf32>
      tpu.vector_store %arg3[%c0_21, %c0_22, %c0_23, %c0_24], %20 {strides = array<i32>} : memref<1x2x8x16xf32, #tpu.memory_space<vmem>>, vector<1x2x8x16xf32>,
    } else {
    }
    %c0 = arith.constant 0 : index
    %c0_1 = arith.constant 0 : index
    %c0_2 = arith.constant 0 : index
    %c0_3 = arith.constant 0 : index
    %3 = vector.load %arg2[%c0, %c0_1, %c0_2, %c0_3] : memref<1x8x16x16xf32, #tpu.memory_space<vmem>>, vector<1x8x16x16xf32>
    %4 = vector.shape_cast %3 : vector<1x8x16x16xf32> to vector<8x16x16xf32>
    %c0_4 = arith.constant 0 : index
    %c0_5 = arith.constant 0 : index
    %c0_6 = arith.constant 0 : index
    %c0_7 = arith.constant 0 : index
    %5 = vector.load %arg3[%c0_4, %c0_5, %c0_6, %c0_7] : memref<1x2x8x16xf32, #tpu.memory_space<vmem>>, vector<1x1x8x16xf32>
    %6 = vector.shape_cast %5 : vector<1x1x8x16xf32> to vector<8x16xf32>
    %cst = arith.constant dense<0.000000e+00> : vector<8x16xf32>
    %7 = vector.multi_reduction <add>, %4, %cst [1] : vector<8x16x16xf32> to vector<8x16xf32>
    %8 = arith.addf %6, %7 : vector<8x16xf32>
    %c0_8 = arith.constant 0 : index
    %c0_9 = arith.constant 0 : index
    %c0_10 = arith.constant 0 : index
    %c0_11 = arith.constant 0 : index
    %9 = vector.load %arg3[%c0_8, %c0_9, %c0_10, %c0_11] : memref<1x2x8x16xf32, #tpu.memory_space<vmem>>, vector<1x1x8x16xf32>
    %10 = vector.shape_cast %9 : vector<1x1x8x16xf32> to vector<8x16xf32>
    %11 = vector.shape_cast %8 : vector<8x16xf32> to vector<1x1x8x16xf32>
    tpu.vector_store %arg3[%c0_8, %c0_9, %c0_10, %c0_11], %11 {strides = array<i32>} : memref<1x2x8x16xf32, #tpu.memory_space<vmem>>, vector<1x1x8x16xf32>,
    %c0_12 = arith.constant 0 : index
    %c1 = arith.constant 1 : index
    %c0_13 = arith.constant 0 : index
    %c0_14 = arith.constant 0 : index
    %12 = vector.load %arg3[%c0_12, %c1, %c0_13, %c0_14] : memref<1x2x8x16xf32, #tpu.memory_space<vmem>>, vector<1x1x8x16xf32>
    %13 = vector.shape_cast %12 : vector<1x1x8x16xf32> to vector<8x16xf32>
    %14 = arith.mulf %4, %4 : vector<8x16x16xf32>
    %cst_15 = arith.constant dense<0.000000e+00> : vector<8x16xf32>
    %15 = vector.multi_reduction <add>, %14, %cst_15 [1] : vector<8x16x16xf32> to vector<8x16xf32>
    %16 = arith.addf %13, %15 : vector<8x16xf32>
    %c0_16 = arith.constant 0 : index
    %c1_17 = arith.constant 1 : index
    %c0_18 = arith.constant 0 : index
    %c0_19 = arith.constant 0 : index
    %17 = vector.load %arg3[%c0_16, %c1_17, %c0_18, %c0_19] : memref<1x2x8x16xf32, #tpu.memory_space<vmem>>, vector<1x1x8x16xf32>
    %18 = vector.shape_cast %17 : vector<1x1x8x16xf32> to vector<8x16xf32>
    %19 = vector.shape_cast %16 : vector<8x16xf32> to vector<1x1x8x16xf32>
    tpu.vector_store %arg3[%c0_16, %c1_17, %c0_18, %c0_19], %19 {strides = array<i32>} : memref<1x2x8x16xf32, #tpu.memory_space<vmem>>, vector<1x1x8x16xf32>,
    return
  }
  func.func @transform_0(%arg0: i32, %arg1: i32) -> (i32, i32, i32, i32) {
    %c0_i32 = arith.constant 0 : i32
    %c0_i32_0 = arith.constant 0 : i32
    %c0_i32_1 = arith.constant 0 : i32
    return %arg0, %c0_i32, %arg1, %c0_i32_0 : i32, i32, i32, i32
  }
  func.func @transform_1(%arg0: i32, %arg1: i32) -> (i32, i32, i32, i32) {
    %c0_i32 = arith.constant 0 : i32
    %c0_i32_0 = arith.constant 0 : i32
    %c0_i32_1 = arith.constant 0 : i32
    %c0_i32_2 = arith.constant 0 : i32
    return %arg0, %c0_i32, %c0_i32_0, %c0_i32_1 : i32, i32, i32, i32
  }
}

</mosaic_0001>

<bundles_post_ra>
// kernel: tpu_custom_call.1
= control target key start
LH: loop header
LB: loop body
LE: loop exit
PB: predicated region body
PF: predicated region fallthrough
CT: control target
= control target key end

     0   :  { %6 = vsyncpa [#allocation3], 0  ;;  %s1028_s0 = inlined_call_operand.hbm [shape: f32[2,8,16,16], index: 0, kind: input, shape index: {}]   ;;  %s1029_s1 = inlined_call_operand.hbm [shape: f32[2,2,8,16], index: 1, kind: output, shape index: {}]  }
   0x1   :  { %8 = vsyncpa [#allocation3 + $0x1], 0 }
   0x2   :  { %9 = vsyncpa [#allocation4], 0 }
   0x3   :  { %11 = vsyncpa [#allocation4 + $0x1], 0  ;;  %s697_s6 = smov 0   ;;  %s699_s7 = smov 0  }
   0x4   :  { %s701_s8 = smov 0   ;;  %s703_s9 = smov 0  }
   0x5   :  { %s705_s10 = smov 0   ;;  %s707_s11 = smov 0  }
   0x6 LB: > { %s480_s12 = sadd.s32 4294967295, %s678_s11   ;;  %s481_s13 = sadd.s32 4294967294, %s678_s11   ;;  %s678_s11 = sphi %s707_s11, %s17_s11   ;;  %s674_s10 = sphi %s705_s10, %s1044_s10   ;;  %s670_s9 = sphi %s703_s9, %s1043_s9   ;;  %s666_s8 = sphi %s701_s8, %s1042_s8   ;;  %s662_s7 = sphi %s699_s7, %s1041_s7   ;;  %s658_s6 = sphi %s697_s6, %s1040_s6  }
   0x7   : > { %s29_s14 = sadd.s32 1, %s674_s10  ;;  %s38_s15 = sadd.s32 1, %s666_s8 }
   0x8   : > { %p31_p0 = scmp.ge.s32.totalorder %s29_s14, 2  ;;  %p45_p1 = scmp.ne.s32.totalorder %s666_s8, %s662_s7 }
   0x9   : > { %p46_p2 = scmp.eq.s32.totalorder %s678_s11, 0  ;;  %p51_p3 = scmp.ne.s32.totalorder %s662_s7, %s658_s6 }
   0xa   : > { %s1046_s14 = smov (%p31_p0, %s29_s14), 0  ;;  %p52_p5 = scmp.eq.s32.totalorder %s480_s12, 0 }
   0xb   : > { %p738_p4 = por %p46_p2, %p45_p1  ;;  %s33_s17 = ssub.s32 %s674_s10, %s1046_s14 }
   0xc   : > { %p75_p6 = scmp.eq.s32.totalorder %s480_s12, 1  ;;  %p36_p7 = scmp.eq.s32.totalorder %s33_s17, 0 }
   0xd   : > { %p744_p8 = por %p52_p5, %p51_p3  ;;  %p81_p10 = scmp.eq.s32.totalorder %s481_s13, 1 }
   0xe   : > { %p748_p9 = por %p75_p6, %p45_p1  ;;  %p511_p13 = scmp.lt.s32.totalorder %s678_s11, 2 }
   0xf   : > { %s753_s20 = scalar_select %p36_p7, %s666_s8, %s38_s15  }
  0x10   : > { %s1033_s19 = scalar_select %p748_p9, 1, 0 }
  0x11   : > { %p755_p11 = por %p81_p10, %p51_p3  ;;  %s101_s22 = sand.u32 1, %s666_s8  }
  0x12   : > { %s484_s23 = sshll.u32 %s101_s22, 7  ;;  %s497_s24 = sshll.u32 %s674_s10, 11 }
  0x13   : > { %s1034_s21 = scalar_select %p755_p11, 1, 0 }
  0x14   : > { %s766_s27 = scalar_lea.hbm %s1028_s0, %s497_s24  ;;  %s105_s28 = scalar_lea.vmem [#allocation2], %s484_s23 }
  0x15   : > { %s114_s29 = sshll.u32 %s105_s28, 4  ;;  %p772_p0 = pnand %p511_p13, %p738_p4  ;;  %s768_s29 = int_to_ptr.vmem [resolvable:$true] %s114_s29 }
  0x16   : > { %s777_s2 = scalar_lea.sflag [#allocation3], %s101_s22  ;;  %s566_s3 = scalar_lea.hbm %s766_s27, 2048 }
  0x17   : > { %p567_p2 = scmp.ne.s32.totalorder %s766_s27, %s566_s3  ;;  %p568_p3 = pneg %p772_p0 }
  0x18   : > { %s571_s12 = scalar_lea.hbm %s1028_s0, 4096  ;;  %p572_p4 = scmp.lt.u32.totalorder %s766_s27, %s1028_s0 }
  0x19   : > { %p569_p5 = pnand %p568_p3, %p567_p2  ;;  %p573_p7 = scmp.lt.u32.totalorder %s571_s12, %s566_s3 }
  0x1a   : > { %p575_p13 = scmp.lt.u32.totalorder %s566_s3, %s766_s27 }
  0x1b   : > { %p570_p6 = pneg %p569_p5  ;;  %p574_p10 = por %p573_p7, %p572_p4 }
  0x1d   : > { %p576_p12 = por %p575_p13, %p574_p10 }
  0x1f   : > { %p577_p1 = pnand %p576_p12, %p570_p6 }
  0x21   : > { %580 = shalt.err (!%p577_p1)
}
  0x22   : > { %s581_s16 = scalar_lea.vmem %s768_s29, 2048  ;;  %s680_s17 = smov [#allocation2]  }
  0x23   : > { %p582_p2 = scmp.ne.s32.totalorder %s768_s29, %s581_s16  ;;  %s586_s22 = sshll.u32 %s680_s17, 4  ;;  %s587_s22 = int_to_ptr.vmem [resolvable:$false] %s586_s22 }
  0x24   : > { %s588_s23 = scalar_lea.vmem %s587_s22, 4096  ;;  %p589_p9 = scmp.lt.s32.totalorder %s768_s29, %s587_s22 }
  0x25   : > { %p584_p5 = pnand %p582_p2, %p568_p3  ;;  %p590_p4 = scmp.lt.s32.totalorder %s588_s23, %s581_s16 }
  0x27   : > { %p585_p11 = pneg %p584_p5  ;;  %p591_p7 = por %p590_p4, %p589_p9 }
  0x29   : > { %p592_p10 = pnand %p591_p7, %p585_p11 }
  0x2b   : > { %595 = shalt.err (!%p592_p10)
}
  0x2c   : > { %s681_s24 = smov 128   ;;  %s682_s25 = smov 8  }
  0x2d   : > { %506 = dma.hbm_to_vmem [thread:$0]  (!%p772_p0), %s766_s27, 2048, %s768_s29, %s777_s2, %s681_s24, %s681_s24, %s682_s25  }
  0x2e   : > { %p122_p12 = scmp.lt.s32.totalorder %s678_s11, 3  ;;  %p1036_p1 = scmp.ge.s32.totalorder %s678_s11, 1 }
  0x30   : > { %p123_p3 = pnand %p1036_p1, %p122_p12 }
  0x31   : > { %s809_s26 = sand.u32 (!%p123_p3), 1, %s662_s7  }
  0x32   : > { %126 = sbr.rel (%p123_p3) target bundleno = 129 (0x81), region = 24  ;;  %s488_s28 = sshll.u32 (!%p123_p3), %s809_s26, 7 }
  0x33   : > { %s129_s3 = scalar_lea.sflag (!%p123_p3), [#allocation3], %s809_s26  ;;  %s813_s4 = scalar_lea.vmem (!%p123_p3), [#allocation2], %s488_s28 }
  0x39   : > { %649 = dma.done.wait (%p744_p8), %s129_s3, 2048  }
  0x3a   : > { %651 = vsyncadd (%p744_p8), %s129_s3, 4294965248  ;;  %s489_s27 = sshll.u32 %s809_s26, 4  ;;  %vm156_vm0 = vcmask 130048   ;;  %v683_v0 = vmov 0.0   ;;  %v159_v1 = vld [vmem:[%s813_s4] sm:$0xff]  ;;  %v828_v2 = vld [vmem:[%s813_s4 + $0x8] sm:$0xff] }
  0x3b   : > { %s820_s29 = scalar_lea.vmem [#allocation5], %s489_s27  ;;  %v831_v3 = vld [vmem:[%s813_s4 + $0x10] sm:$0xff]  ;;  %v834_v4 = vld [vmem:[%s813_s4 + $0x18] sm:$0xff]  ;;  %v837_v5 = vld [vmem:[%s813_s4 + $0x20] sm:$0xff]  ;;  %v177_v7 = vsel %vm156_vm0, %v159_v1, 0.0  ;;  %v178_v8 = vsel %vm156_vm0, %v828_v2, 0.0  ;;  %v847_v10 = vmul.f32 %v159_v1, %v159_v1 }
  0x3c   : > { %157 = vst.msk [vmem:[%s820_s29] sm:$0xff] %vm156_vm0, %v683_v0  ;;  %158 = vst.msk [vmem:[%s820_s29 + $0x8] sm:$0xff] %vm156_vm0, %v683_v0  ;;  %v840_v6 = vld [vmem:[%s813_s4 + $0x28] sm:$0xff]  ;;  %v186_v9 = vsel %vm156_vm0, %v831_v3, 0.0  ;;  %v850_v11 = vld [vmem:[%s813_s4 + $0x30] sm:$0xff]  ;;  %v179_v13 = vadd.f32 %v178_v8, %v177_v7  ;;  %v187_v14 = vsel %vm156_vm0, %v834_v4, 0.0 }
  0x3d   : > { %v853_v12 = vld [vmem:[%s813_s4 + $0x38] sm:$0xff]  ;;  %v195_v15 = vsel %vm156_vm0, %v837_v5, 0.0  ;;  %v196_v16 = vsel %vm156_vm0, %v840_v6, 0.0  ;;  %v862_v17 = vld [vmem:[%s813_s4 + $0x40] sm:$0xff]  ;;  %v865_v18 = vld [vmem:[%s813_s4 + $0x48] sm:$0xff]  ;;  %v188_v19 = vadd.f32 %v187_v14, %v186_v9  ;;  %v204_v21 = vsel %vm156_vm0, %v850_v11, 0.0 }
  0x3e   : > { %v197_v20 = vadd.f32 %v196_v16, %v195_v15  ;;  %v205_v22 = vsel %vm156_vm0, %v853_v12, 0.0  ;;  %v872_v23 = vld [vmem:[%s813_s4 + $0x50] sm:$0xff]  ;;  %v180_v24 = vrot.slane %v179_v13, 4  ;;  %v213_v26 = vsel %vm156_vm0, %v862_v17, 0.0  ;;  %v879_v28 = vld [vmem:[%s813_s4 + $0x58] sm:$0xff]  ;;  %v882_v29 = vld [vmem:[%s813_s4 + $0x60] sm:$0xff] }
  0x3f   : > { %v206_v25 = vadd.f32 %v205_v22, %v204_v21  ;;  %v214_v27 = vsel %vm156_vm0, %v865_v18, 0.0  ;;  %v189_v30 = vrot.slane %v188_v19, 4  ;;  %v222_v33 = vsel %vm156_vm0, %v872_v23, 0.0  ;;  %v891_v38 = vld [vmem:[%s813_s4 + $0x68] sm:$0xff]  ;;  %v894_v39 = vld [vmem:[%s813_s4 + $0x70] sm:$0xff]  ;;  %v901_v48 = vld [vmem:[%s813_s4 + $0x78] sm:$0xff] }
  0x40   : > { %v198_v31 = vrot.slane %v197_v20, 4  ;;  %v215_v32 = vadd.f32 %v214_v27, %v213_v26  ;;  %v181_v34 = vadd.f32 %v180_v24, %v179_v13  ;;  %v223_v36 = vsel %vm156_vm0, %v879_v28, 0.0  ;;  %s498_s18 = sshll.u32 %s670_s9, 8  ;;  %s396_s30 = sshll.u32 %s820_s29, 4  ;;  %s977_s30 = int_to_ptr.vmem [resolvable:$true] %s396_s30 }
  0x41   : > { %v207_v35 = vrot.slane %v206_v25, 4  ;;  %v231_v37 = vsel %vm156_vm0, %v882_v29, 0.0  ;;  %vm257_vm1 = vcmask 1041409   ;;  %v190_v40 = vadd.f32 %v189_v30, %v188_v19  ;;  %s975_s12 = scalar_lea.hbm %s1029_s1, %s498_s18  ;;  %s383_s9 = scalar_lea.sflag [#allocation4], %s809_s26 }
  0x42   : > { %v199_v41 = vadd.f32 %v198_v31, %v197_v20  ;;  %v216_v42 = vrot.slane %v215_v32, 4  ;;  %v224_v43 = vadd.f32 %v223_v36, %v222_v33  ;;  %vm259_vm2 = vcmask 1042434   ;;  %s596_s13 = scalar_lea.vmem %s977_s30, 256  ;;  %p1037_p9 = scmp.ne.s32.totalorder %s1033_s19, 0 }
  0x43   : > { %v182_v44 = vrot.slane %v181_v34, 2  ;;  %v208_v45 = vadd.f32 %v207_v35, %v206_v25  ;;  %v232_v46 = vsel %vm156_vm0, %v891_v38, 0.0  ;;  %v240_v47 = vsel %vm156_vm0, %v894_v39, 0.0  ;;  %p597_p8 = scmp.ne.s32.totalorder %s977_s30, %s596_s13  ;;  %s684_s15 = smov [#allocation5]  }
  0x44   : > { %vm261_vm3 = vcmask 1043459   ;;  %v191_v49 = vrot.slane %v190_v40, 2  ;;  %v200_v50 = vrot.slane %v199_v41, 2  ;;  %v217_v51 = vadd.f32 %v216_v42, %v215_v32  ;;  %s600_s16 = sshll.u32 %s684_s15, 4  ;;  %s601_s16 = int_to_ptr.vmem [resolvable:$false] %s600_s16 }
  0x45   : > { %v225_v52 = vrot.slane %v224_v43, 4  ;;  %vm263_vm4 = vcmask 1044484   ;;  %v183_v53 = vadd.f32 %v182_v44, %v181_v34  ;;  %v209_v54 = vrot.slane %v208_v45, 2  ;;  %p598_p11 = pnand %p597_p8, %p1037_p9  ;;  %s602_s17 = scalar_lea.vmem %s601_s16, 512 }
  0x46   : > { %v233_v55 = vadd.f32 %v232_v46, %v231_v37  ;;  %v241_v56 = vsel %vm156_vm0, %v901_v48, 0.0  ;;  %vm265_vm5 = vcmask 1045509   ;;  %v192_v57 = vadd.f32 %v191_v49, %v190_v40  ;;  %p603_p6 = scmp.lt.s32.totalorder %s977_s30, %s601_s16  ;;  %p604_p13 = scmp.lt.s32.totalorder %s602_s17, %s596_s13 }
  0x47   : > { %v201_v58 = vadd.f32 %v200_v50, %v199_v41  ;;  %v218_v59 = vrot.slane %v217_v51, 2  ;;  %v226_v60 = vadd.f32 %v225_v52, %v224_v43  ;;  %v184_v61 = vrot.slane %v183_v53, 1  ;;  %v175_v52 = vld [vmem:[%s820_s29] sm:$0xff]  ;;  %p599_p0 = pneg %p598_p11 }
  0x48   : > { %v210_v62 = vadd.f32 %v209_v54, %v208_v45  ;;  %v234_v63 = vrot.slane %v233_v55, 4  ;;  %v242_v0 = vadd.f32 %v241_v56, %v240_v47  ;;  %v193_v1 = vrot.slane %v192_v57, 1  ;;  %p605_p2 = por %p604_p13, %p603_p6 }
  0x49   : > { %v202_v7 = vrot.slane %v201_v58, 1  ;;  %v219_v8 = vadd.f32 %v218_v59, %v217_v51  ;;  %v227_v9 = vrot.slane %v226_v60, 2  ;;  %vm267_vm6 = vcmask 1046534  }
  0x4a   : > { %v185_v13 = vadd.f32 %v184_v61, %v183_v53  ;;  %v211_v14 = vrot.slane %v210_v62, 1  ;;  %v235_v15 = vadd.f32 %v234_v63, %v233_v55  ;;  %v243_v16 = vrot.slane %v242_v0, 4  ;;  %p606_p5 = pnand %p605_p2, %p599_p0 }
  0x4b   : > { %v194_v19 = vadd.f32 %v193_v1, %v192_v57  ;;  %v203_v20 = vadd.f32 %v202_v7, %v201_v58  ;;  %v220_v21 = vrot.slane %v219_v8, 1  ;;  %v228_v22 = vadd.f32 %v227_v9, %v226_v60 }
  0x4c   : > { %vm269_vm7 = vcmask 1047559   ;;  %v212_v24 = vadd.f32 %v211_v14, %v210_v62  ;;  %v236_v25 = vrot.slane %v235_v15, 2  ;;  %v244_v26 = vadd.f32 %v243_v16, %v242_v0 }
  0x4d   : > { %v277_v27 = vmul.f32 %v828_v2, %v828_v2  ;;  %v221_v30 = vadd.f32 %v220_v21, %v219_v8  ;;  %v229_v31 = vrot.slane %v228_v22, 1  ;;  %v258_v32 = vsel %vm257_vm1, %v194_v19, %v185_v13 }
  0x4e   : > { %v278_v33 = vmul.f32 %v831_v3, %v831_v3  ;;  %v237_v34 = vadd.f32 %v236_v25, %v235_v15  ;;  %v245_v35 = vrot.slane %v244_v26, 2  ;;  %v260_v36 = vsel %vm259_vm2, %v203_v20, %v258_v32 }
  0x4f   : > { %v279_v37 = vmul.f32 %v834_v4, %v834_v4  ;;  %v230_v40 = vadd.f32 %v229_v31, %v228_v22  ;;  %v262_v41 = vsel %vm261_vm3, %v212_v24, %v260_v36  ;;  %v280_v2 = vmul.f32 %v837_v5, %v837_v5 }
  0x50   : > { %v281_v42 = vmul.f32 %v840_v6, %v840_v6  ;;  %v238_v43 = vrot.slane %v237_v34, 1  ;;  %v246_v44 = vadd.f32 %v245_v35, %v244_v26  ;;  %v264_v3 = vsel %vm263_vm4, %v221_v30, %v262_v41 }
  0x51   : > { %v282_v45 = vmul.f32 %v850_v11, %v850_v11  ;;  %v266_v46 = vsel %vm265_vm5, %v230_v40, %v264_v3  ;;  %v283_v4 = vmul.f32 %v853_v12, %v853_v12  ;;  %v284_v47 = vmul.f32 %v862_v17, %v862_v17 }
  0x52   : > { %v285_v5 = vmul.f32 %v865_v18, %v865_v18  ;;  %v239_v6 = vadd.f32 %v238_v43, %v237_v34  ;;  %v247_v49 = vrot.slane %v246_v44, 1  ;;  %v286_v50 = vmul.f32 %v872_v23, %v872_v23 }
  0x53   : > { %v287_v51 = vmul.f32 %v879_v28, %v879_v28  ;;  %v288_v11 = vmul.f32 %v882_v29, %v882_v29  ;;  %v289_v12 = vmul.f32 %v891_v38, %v891_v38  ;;  %v290_v17 = vmul.f32 %v894_v39, %v894_v39 }
  0x54   : > { %v291_v18 = vmul.f32 %v901_v48, %v901_v48  ;;  %v248_v53 = vadd.f32 %v247_v49, %v246_v44  ;;  %v268_v54 = vsel %vm267_vm6, %v239_v6, %v266_v46  ;;  %v292_v23 = vsel %vm156_vm0, %v847_v10, 0.0 }
  0x55   : > { %v293_v28 = vsel %vm156_vm0, %v277_v27, 0.0  ;;  %v301_v29 = vsel %vm156_vm0, %v278_v33, 0.0  ;;  %v302_v38 = vsel %vm156_vm0, %v279_v37, 0.0  ;;  %v310_v39 = vsel %vm156_vm0, %v280_v2, 0.0 }
  0x56   : > { %v294_v55 = vadd.f32 %v293_v28, %v292_v23  ;;  %v270_v56 = vsel %vm269_vm7, %v248_v53, %v268_v54  ;;  %v303_v48 = vadd.f32 %v302_v38, %v301_v29  ;;  %v311_v57 = vsel %vm156_vm0, %v281_v42, 0.0 }
  0x57   : > { %v319_v58 = vsel %vm156_vm0, %v282_v45, 0.0  ;;  %v272_v59 = vadd.f32 %v270_v56, %v175_v52  ;;  %v312_v10 = vadd.f32 %v311_v57, %v310_v39  ;;  %v320_v61 = vsel %vm156_vm0, %v283_v4, 0.0 }
  0x58   : > { %v295_v60 = vrot.slane %v294_v55, 4  ;;  %v304_v62 = vrot.slane %v303_v48, 4  ;;  %v321_v63 = vadd.f32 %v320_v61, %v319_v58  ;;  %v328_v0 = vsel %vm156_vm0, %v284_v47, 0.0 }
  0x59   : > { %v329_v1 = vsel %vm156_vm0, %v285_v5, 0.0  ;;  %273 = vst.msk [vmem:[%s820_s29] sm:$0xff] %vm156_vm0, %v272_v59  ;;  %v313_v8 = vrot.slane %v312_v10, 4  ;;  %v337_v13 = vsel %vm156_vm0, %v286_v50, 0.0  ;;  %v338_v16 = vsel %vm156_vm0, %v287_v51, 0.0 }
  0x5a   : > { %v296_v7 = vadd.f32 %v295_v60, %v294_v55  ;;  %v330_v9 = vadd.f32 %v329_v1, %v328_v0  ;;  %v305_v14 = vadd.f32 %v304_v62, %v303_v48  ;;  %v322_v15 = vrot.slane %v321_v63, 4  ;;  %v490_v62 = vld [vmem:[%s820_s29 + $0x8] sm:$0xff] }
  0x5b   : > { %v346_v19 = vsel %vm156_vm0, %v288_v11, 0.0  ;;  %v314_v21 = vadd.f32 %v313_v8, %v312_v10  ;;  %v339_v24 = vadd.f32 %v338_v16, %v337_v13  ;;  %v347_v27 = vsel %vm156_vm0, %v289_v12, 0.0 }
  0x5c   : > { %v297_v20 = vrot.slane %v296_v7, 2  ;;  %v331_v22 = vrot.slane %v330_v9, 4  ;;  %v306_v25 = vrot.slane %v305_v14, 2  ;;  %v323_v26 = vadd.f32 %v322_v15, %v321_v63 }
  0x5d   : > { %v355_v30 = vsel %vm156_vm0, %v290_v17, 0.0  ;;  %v315_v32 = vrot.slane %v314_v21, 2  ;;  %v340_v34 = vrot.slane %v339_v24, 4  ;;  %v348_v37 = vadd.f32 %v347_v27, %v346_v19 }
  0x5e   : > { %v298_v31 = vadd.f32 %v297_v20, %v296_v7  ;;  %v332_v33 = vadd.f32 %v331_v22, %v330_v9  ;;  %v307_v35 = vadd.f32 %v306_v25, %v305_v14  ;;  %v324_v36 = vrot.slane %v323_v26, 2 }
  0x5f   : > { %v356_v40 = vsel %vm156_vm0, %v291_v18, 0.0  ;;  %v316_v2 = vadd.f32 %v315_v32, %v314_v21  ;;  %v341_v43 = vadd.f32 %v340_v34, %v339_v24  ;;  %v349_v45 = vrot.slane %v348_v37, 4 }
  0x60   : > { %v299_v41 = vrot.slane %v298_v31, 1  ;;  %v333_v42 = vrot.slane %v332_v33, 2  ;;  %v308_v44 = vrot.slane %v307_v35, 1  ;;  %v325_v3 = vadd.f32 %v324_v36, %v323_v26 }
  0x61   : > { %v357_v46 = vadd.f32 %v356_v40, %v355_v30  ;;  %v317_v47 = vrot.slane %v316_v2, 1  ;;  %v342_v6 = vrot.slane %v341_v43, 2  ;;  %v350_v51 = vadd.f32 %v349_v45, %v348_v37 }
  0x62   : > { %v300_v4 = vadd.f32 %v299_v41, %v298_v31  ;;  %v334_v5 = vadd.f32 %v333_v42, %v332_v33  ;;  %v309_v49 = vadd.f32 %v308_v44, %v307_v35  ;;  %v326_v50 = vrot.slane %v325_v3, 1 }
  0x63   : > { %v358_v11 = vrot.slane %v357_v46, 4  ;;  %v318_v12 = vadd.f32 %v317_v47, %v316_v2  ;;  %v343_v52 = vadd.f32 %v342_v6, %v341_v43  ;;  %v351_v53 = vrot.slane %v350_v51, 2 }
  0x64   : > { %v335_v17 = vrot.slane %v334_v5, 1  ;;  %v327_v18 = vadd.f32 %v326_v50, %v325_v3  ;;  %v372_v23 = vsel %vm257_vm1, %v309_v49, %v300_v4 }
  0x65   : > { %v359_v54 = vadd.f32 %v358_v11, %v357_v46  ;;  %v344_v55 = vrot.slane %v343_v52, 1  ;;  %v373_v29 = vsel %vm259_vm2, %v318_v12, %v372_v23  ;;  %v352_v38 = vadd.f32 %v351_v53, %v350_v51 }
  0x66   : > { %v336_v28 = vadd.f32 %v335_v17, %v334_v5  ;;  %v374_v56 = vsel %vm261_vm3, %v327_v18, %v373_v29 }
  0x67   : > { %v360_v39 = vrot.slane %v359_v54, 2  ;;  %v345_v48 = vadd.f32 %v344_v55, %v343_v52  ;;  %v353_v58 = vrot.slane %v352_v38, 1 }
  0x68   : > { %v375_v57 = vsel %vm263_vm4, %v336_v28, %v374_v56 }
  0x69   : > { %v361_v59 = vadd.f32 %v360_v39, %v359_v54  ;;  %v376_v60 = vsel %vm265_vm5, %v345_v48, %v375_v57  ;;  %v354_v10 = vadd.f32 %v353_v58, %v352_v38 }
  0x6b   : > { %v362_v61 = vrot.slane %v361_v59, 1  ;;  %v377_v0 = vsel %vm267_vm6, %v354_v10, %v376_v60 }
  0x6d   : > { %v363_v63 = vadd.f32 %v362_v61, %v361_v59 }
  0x6f   : > { %v378_v1 = vsel %vm269_vm7, %v363_v63, %v377_v0 }
  0x70   : > { %v380_v7 = vadd.f32 %v490_v62, %v378_v1 }
  0x72   : > { %491 = vst.msk [vmem:[%s820_s29 + $0x8] sm:$0xff] %vm156_vm0, %v380_v7 }
  0x73   : > { %609 = shalt.err (!%p606_p5)
}
  0x74   : > { %s610_s22 = scalar_lea.hbm %s975_s12, 256  ;;  %s614_s25 = scalar_lea.hbm %s1029_s1, 512 }
  0x75   : > { %p611_p4 = scmp.ne.s32.totalorder %s975_s12, %s610_s22  ;;  %p615_p12 = scmp.lt.u32.totalorder %s975_s12, %s1029_s1 }
  0x76   : > { %p616_p1 = scmp.lt.u32.totalorder %s614_s25, %s610_s22  ;;  %p618_p8 = scmp.lt.u32.totalorder %s610_s22, %s975_s12 }
  0x77   : > { %p612_p7 = pnand %p611_p4, %p1037_p9 }
  0x78   : > { %p617_p3 = por %p616_p1, %p615_p12 }
  0x79   : > { %p613_p10 = pneg %p612_p7 }
  0x7a   : > { %p619_p11 = por %p618_p8, %p617_p3 }
  0x7c   : > { %p620_p0 = pnand %p619_p11, %p613_p10 }
  0x7e   : > { %623 = shalt.err (!%p620_p0)
}
  0x7f   : > { %s685_s4 = smov 128   ;;  %s686_s27 = smov 8  }
  0x80   : > { %501 = dma.vmem_to_hbm [thread:$0]  (%p1037_p9), %s977_s30, 256, %s975_s12, %s383_s9, %s685_s4, %s685_s4, %s686_s27  }
  0x81 PF: > { %s411_s29 = sand.u32 1, %s658_s6   ;;  %p1038_p6 = scmp.ne.s32.totalorder %s1034_s21, 0 }
  0x82   : > { %p1039_p13 = scmp.ge.s32.totalorder %s678_s11, 2  ;;  %s412_s18 = scalar_lea.sflag [#allocation4], %s411_s29 }
  0x84   : > { %p508_p2 = pnand %p1039_p13, %p1038_p6 }
  0x86   : > { %653 = dma.done.wait (!%p508_p2), %s412_s18, 256  }
  0x87   : > { %655 = vsyncadd (!%p508_p2), %s412_s18, 4294967040  ;;  %s17_s11 = sadd.s32 1, %s678_s11   ;;  %s1040_s6 = smov %s662_s7 }
  0x88   : > { %p14_p5 = scmp.ge.s32.totalorder %s17_s11, 4   ;;  %s1041_s7 = smov %s666_s8 }
  0x89   : > { %s1042_s8 = smov %s753_s20  ;;  %s1043_s9 = smov %s674_s10 }
  0x8a   : > { %s1044_s10 = smov %s1046_s14  ;;  %16 = sbr.rel (!%p14_p5) target bundleno = 6 (0x6), region = 74 }
  0x91   :  { %417 = vsyncpa [#allocation3], 1 }
  0x92   :  { %419 = vsyncpa [#allocation3 + $0x1], 1 }
  0x93   :  { %420 = vsyncpa [#allocation4], 1 }
  0x94   :  { %422 = vsyncpa [#allocation4 + $0x1], 1 }

</bundles_post_ra>
